<compile_context>
chip_gen: v5e
topology: v5e:2x2
jax: 0.10.0
libtpu: 0.0.40
codegen_flags: <defaults>
</compile_context>

<pallas_src>
import functools

import jax
import jax.numpy as jnp
from jax.experimental import pallas as pl
from jax.experimental.pallas import tpu as pltpu


def _round_up(v, m):
    return ((v + m - 1) // m) * m


def _vmem_capacity_bytes():
    """Physical per-core VMEM; conservative fallback (v7x = 64 MiB per TC)."""
    try:
        info = pltpu.get_tpu_info()
        cap = getattr(info, "vmem_capacity_bytes", None)
        if cap:
            return int(cap)
    except Exception:
        pass
    return 64 * 1024 * 1024


def _choose_tiles(*, N, S_p, C_in_p, hidden_p, C_out_p, cbytes, obytes,
                  budget, granule):
    """Pick (spatial tile tS, hidden chunk tH) that fit the VMEM budget.

    Per-step VMEM model (weights counted double-buffered to stay conservative
    even when the single-buffer fallback path is taken):
      x in        : 2 * C_in_p  * tS * cbytes
      out         : 2 * C_out_p * tS * obytes
      weights     : 2 * (hidden_p*C_in_p + C_out_p*hidden_p) * cbytes
      biases      : 2 * (hidden_p + C_out_p) * 4
      hidden temp : tH * tS * (4 + cbytes)     (f32 temp + low-precision copy)
      accumulator : C_out_p * tS * 4
    """
    def usage(tS, tH):
        return (2 * C_in_p * tS * cbytes
                + 2 * C_out_p * tS * obytes
                + 2 * (hidden_p * C_in_p + C_out_p * hidden_p) * cbytes
                + 2 * (hidden_p + C_out_p) * 4
                + tH * tS * (4 + cbytes)
                + C_out_p * tS * 4)

    # Spatial tile candidates: multiples of 128 dividing S_p, plus S_p itself.
    s_cands = [t for t in range(S_p, 0, -128) if S_p % t == 0]
    if not s_cands or s_cands[0] != S_p:
        s_cands = [S_p] + s_cands
    # v7x has two TensorCores: with batch==1 make sure the "parallel" spatial
    # grid axis gives at least two work items.
    if N == 1 and S_p >= 256:
        multi = [t for t in s_cands if S_p // t >= 2]
        if multi:
            s_cands = multi
    # Hidden-chunk candidates: granule-multiple divisors of hidden_p.
    h_cands = [h for h in range(hidden_p, 0, -granule) if hidden_p % h == 0]
    if not h_cands:
        h_cands = [hidden_p]

    for tS in s_cands:            # prefer the largest lane-dense spatial tile
        for tH in h_cands:        # then the largest hidden chunk that fits
            if usage(tS, tH) <= budget:
                return tS, tH
    return s_cands[-1], h_cands[-1]   # smallest tiles; let the compiler cope


def _make_conv_mlp_kernel(tile_h, num_chunks):
    def kernel(x_ref, w1_ref, b1_ref, w2_ref, b2_ref, o_ref):
        """Fused 1x1-conv MLP for one (batch, spatial-tile) block.

        x_ref : (C_in_p, tS)        input slab (batch dim squeezed)
        w1_ref: (hidden_p, C_in_p)  fc1 weight (resident)
        b1_ref: (hidden_p, 1)       fc1 bias, f32
        w2_ref: (C_out_p, hidden_p) fc2 weight (resident)
        b2_ref: (C_out_p, 1)        fc2 bias, f32
        o_ref : (C_out_p, tS)       output slab
        """
        x = x_ref[...]
        acc = jnp.zeros(o_ref.shape, jnp.float32)
        # Static hidden-chunk loop: only a (tile_h, tS) activation slice is
        # live at a time, decoupling tS from the hidden width.
        for c in range(num_chunks):
            lo = c * tile_h
            hi = lo + tile_h
            h = jnp.dot(w1_ref[lo:hi, :], x,
                        preferred_element_type=jnp.float32)     # MXU, f32 acc
            h = jnp.maximum(h + b1_ref[lo:hi, :], 0.0)           # bias+ReLU f32
            acc = acc + jnp.dot(w2_ref[:, lo:hi], h.astype(w2_ref.dtype),
                                preferred_element_type=jnp.float32)
        o_ref[...] = (acc + b2_ref[...]).astype(o_ref.dtype)
    return kernel


def _build_call(*, kernel, N, C_in_p, hidden_p, C_out_p, S_p, tS, out_dtype,
                vmem_limit, cost, single_buffer_weights):
    w_kw = {}
    if single_buffer_weights and hasattr(pl, "Buffered"):
        # Weights/biases are grid-invariant: one VMEM copy is enough.
        w_kw = dict(pipeline_mode=pl.Buffered(1))
    in_specs = [
        pl.BlockSpec((None, C_in_p, tS), lambda n, s: (n, 0, s)),        # x
        pl.BlockSpec((hidden_p, C_in_p), lambda n, s: (0, 0), **w_kw),   # W1
        pl.BlockSpec((hidden_p, 1), lambda n, s: (0, 0), **w_kw),        # b1
        pl.BlockSpec((C_out_p, hidden_p), lambda n, s: (0, 0), **w_kw),  # W2
        pl.BlockSpec((C_out_p, 1), lambda n, s: (0, 0), **w_kw),         # b2
    ]
    return pl.pallas_call(
        kernel,
        out_shape=jax.ShapeDtypeStruct((N, C_out_p, S_p), out_dtype),
        grid=(N, S_p // tS),
        in_specs=in_specs,
        out_specs=pl.BlockSpec((None, C_out_p, tS), lambda n, s: (n, 0, s)),
        compiler_params=pltpu.CompilerParams(
            dimension_semantics=("parallel", "parallel"),
            vmem_limit_bytes=int(vmem_limit)),
        cost_estimate=cost,
    )


def conv_mlp_forward(x, w1, b1, w2, b2, *, compute_dtype=jnp.bfloat16):
    """ConvMlp forward: x (N, C_in, H, W) -> (N, C_out, H, W).

    w1: (hidden, C_in), b1: (hidden,), w2: (C_out, hidden), b2: (C_out,).
    Matmuls run in `compute_dtype` with f32 MXU accumulation; bias and ReLU are
    applied in f32; the output keeps x.dtype.
    """
    N, C_in, H, W = x.shape
    hidden = w1.shape[0]
    C_out = w2.shape[0]
    S = H * W
    out_dtype = x.dtype

    cdtype = jnp.dtype(compute_dtype)
    cbytes = cdtype.itemsize
    obytes = jnp.dtype(out_dtype).itemsize
    granule = 16 if cbytes == 2 else 8        # sublane packing granule

    # Zero-pad channel dims to the sublane granule (exact: zero rows/cols add
    # nothing); pad the flattened spatial axis to a multiple of 128 so every
    # tile is lane-dense (unmasked vector stores).
    C_in_p = _round_up(C_in, granule)
    hidden_p = _round_up(hidden, granule)
    C_out_p = _round_up(C_out, granule)
    S_p = S if (S % 128 == 0 or S < 128) else _round_up(S, 128)

    x2 = x.astype(cdtype).reshape(N, C_in, S)
    if C_in_p != C_in or S_p != S:
        x2 = jnp.pad(x2, ((0, 0), (0, C_in_p - C_in), (0, S_p - S)))
    w1c = w1.astype(cdtype)
    w2c = w2.astype(cdtype)
    b1c = b1.astype(jnp.float32).reshape(hidden, 1)
    b2c = b2.astype(jnp.float32).reshape(C_out, 1)
    if hidden_p != hidden or C_in_p != C_in:
        w1c = jnp.pad(w1c, ((0, hidden_p - hidden), (0, C_in_p - C_in)))
        b1c = jnp.pad(b1c, ((0, hidden_p - hidden), (0, 0)))
    if C_out_p != C_out or hidden_p != hidden:
        w2c = jnp.pad(w2c, ((0, C_out_p - C_out), (0, hidden_p - hidden)))
        b2c = jnp.pad(b2c, ((0, C_out_p - C_out), (0, 0)))

    # VMEM-aware tile selection with an explicit scoped limit per generation.
    cap = _vmem_capacity_bytes()
    vmem_limit = max(32 * 1024 * 1024, min(int(cap * 0.75), 112 * 1024 * 1024))
    budget = int(vmem_limit * 0.85)
    tS, tH = _choose_tiles(N=N, S_p=S_p, C_in_p=C_in_p, hidden_p=hidden_p,
                           C_out_p=C_out_p, cbytes=cbytes, obytes=obytes,
                           budget=budget, granule=granule)
    num_chunks = hidden_p // tH

    kernel = _make_conv_mlp_kernel(tH, num_chunks)
    cost = pl.CostEstimate(
        flops=2 * N * S_p * (C_in_p * hidden_p + hidden_p * C_out_p),
        transcendentals=0,
        bytes_accessed=(N * C_in_p * S_p * cbytes
                        + N * C_out_p * S_p * obytes
                        + (hidden_p * C_in_p + C_out_p * hidden_p) * cbytes
                        + (hidden_p + C_out_p) * 4),
    )

    args = (x2, w1c, b1c, w2c, b2c)
    build = functools.partial(
        _build_call, kernel=kernel, N=N, C_in_p=C_in_p, hidden_p=hidden_p,
        C_out_p=C_out_p, S_p=S_p, tS=tS, out_dtype=out_dtype,
        vmem_limit=vmem_limit, cost=cost)
    try:
        out = build(single_buffer_weights=True)(*args)
    except Exception:
        # pipeline_mode=pl.Buffered(1) not supported by this JAX build; fall
        # back to default double-buffered weights (identical results).
        out = build(single_buffer_weights=False)(*args)

    out = out[:, :C_out, :S]
    return out.reshape(N, C_out, H, W)


class ConvMlpPallas:
    """JAX/Pallas port of the timm ConvMlp module (1x1 convs keep spatial)."""

    def __init__(self, in_features, hidden_features=None, out_features=None,
                 bias=True, compute_dtype=jnp.bfloat16, key=None):
        out_features = out_features or in_features
        hidden_features = hidden_features or in_features
        self.in_features = in_features
        self.hidden_features = hidden_features
        self.out_features = out_features
        self.compute_dtype = compute_dtype

        if key is None:
            key = jax.random.PRNGKey(0)
        ks = jax.random.split(key, 4)
        # 1x1 Conv2d weights with the trivial (1, 1) spatial taps squeezed:
        # fc1.weight (hidden, in, 1, 1) -> (hidden, in); same for fc2.
        self.w1 = 0.1 * jax.random.normal(
            ks[0], (hidden_features, in_features), jnp.float32)
        self.b1 = (0.1 * jax.random.normal(ks[1], (hidden_features,), jnp.float32)
                   if bias else jnp.zeros((hidden_features,), jnp.float32))
        self.w2 = 0.1 * jax.random.normal(
            ks[2], (out_features, hidden_features), jnp.float32)
        self.b2 = (0.1 * jax.random.normal(ks[3], (out_features,), jnp.float32)
                   if bias else jnp.zeros((out_features,), jnp.float32))

    def __call__(self, x):
        return conv_mlp_forward(x, self.w1, self.b1, self.w2, self.b2,
                                compute_dtype=self.compute_dtype)


def _ref_conv_mlp(x, w1, b1, w2, b2, compute_dtype=jnp.bfloat16):
    """Pure-JAX reference mirroring the kernel numerics (bf16 ops, f32 acc)."""
    cdtype = jnp.dtype(compute_dtype)
    h = jnp.einsum("oc,nchw->nohw", w1.astype(cdtype), x.astype(cdtype),
                   preferred_element_type=jnp.float32)
    h = jnp.maximum(h + b1.astype(jnp.float32)[None, :, None, None], 0.0)
    o = jnp.einsum("oc,nchw->nohw", w2.astype(cdtype), h.astype(cdtype),
                   preferred_element_type=jnp.float32)
    o = o + b2.astype(jnp.float32)[None, :, None, None]
    return o.astype(x.dtype)


if __name__ == "__main__":
    N, C_in, H, W = 2, 4, 16, 16
    hidden = 32

    key = jax.random.PRNGKey(0)
    kx, kp = jax.random.split(key)
    x = jax.random.normal(kx, (N, C_in, H, W), jnp.float32)

    mod = ConvMlpPallas(C_in, hidden_features=hidden, key=kp)
    out = jax.block_until_ready(mod(x))
    assert out.shape == (N, C_in, H, W)
    assert out.dtype == x.dtype

    # Silent correctness check against a pure-JAX reference with the same
    # bf16-operand / f32-accumulation numerics as the kernel.
    ref = _ref_conv_mlp(x, mod.w1, mod.b1, mod.w2, mod.b2)
    assert jnp.allclose(out, ref, atol=1e-2, rtol=1e-2), (
        float(jnp.max(jnp.abs(out - ref))))

    print("KERNEL_OK")
</pallas_src>

<mosaic_0001>
module attributes {stable_mosaic.version = 11 : i64} {
  func.func @kernel(%arg0: i32, %arg1: i32, %arg2: memref<1x16x256xbf16, #tpu.memory_space<vmem>>, %arg3: memref<32x16xbf16, #tpu.memory_space<vmem>>, %arg4: memref<32x1xf32, #tpu.memory_space<vmem>>, %arg5: memref<16x32xbf16, #tpu.memory_space<vmem>>, %arg6: memref<16x1xf32, #tpu.memory_space<vmem>>, %arg7: memref<1x16x256xf32, #tpu.memory_space<vmem>>) attributes {dimension_semantics = [#tpu.dimension_semantics<parallel>, #tpu.dimension_semantics<parallel>], iteration_bounds = array<i64: 2, 1>, scalar_prefetch = 0 : i64, scratch_operands = 0 : i64, tpu.core_type = #tpu.core_type<tc>, window_params = [{transform_indices = @transform_0, window_bounds = array<i64: 1, 16, 256>}, {pipeline_mode = #tpu.pipeline_mode<synchronous>, transform_indices = @transform_1, window_bounds = array<i64: 32, 16>}, {pipeline_mode = #tpu.pipeline_mode<synchronous>, transform_indices = @transform_2, window_bounds = array<i64: 32, 1>}, {pipeline_mode = #tpu.pipeline_mode<synchronous>, transform_indices = @transform_3, window_bounds = array<i64: 16, 32>}, {pipeline_mode = #tpu.pipeline_mode<synchronous>, transform_indices = @transform_4, window_bounds = array<i64: 16, 1>}, {transform_indices = @transform_5, window_bounds = array<i64: 1, 16, 256>}]} {
    %c0 = arith.constant 0 : index
    %c0_0 = arith.constant 0 : index
    %c0_1 = arith.constant 0 : index
    %0 = vector.load %arg2[%c0, %c0_0, %c0_1] : memref<1x16x256xbf16, #tpu.memory_space<vmem>>, vector<1x16x256xbf16>
    %1 = vector.shape_cast %0 : vector<1x16x256xbf16> to vector<16x256xbf16>
    %cst = arith.constant 0.000000e+00 : f32
    %2 = vector.broadcast %cst : f32 to vector<16x256xf32>
    %c0_2 = arith.constant 0 : index
    %c0_3 = arith.constant 0 : index
    %3 = vector.load %arg3[%c0_2, %c0_3] : memref<32x16xbf16, #tpu.memory_space<vmem>>, vector<32x16xbf16>
    %cst_4 = arith.constant dense<0.000000e+00> : vector<32x256xf32>
    %4 = tpu.matmul %3, %1, %cst_4 {dimension_numbers = #tpu.dot_dimension_numbers<[1], [0], [0], [1], [0, 0, 1, 1], [], []>} : vector<32x16xbf16>, vector<16x256xbf16>, vector<32x256xf32> -> vector<32x256xf32>
    %c0_5 = arith.constant 0 : index
    %c0_6 = arith.constant 0 : index
    %5 = vector.load %arg4[%c0_5, %c0_6] : memref<32x1xf32, #tpu.memory_space<vmem>>, vector<32x1xf32>
    %6 = vector.broadcast %5 : vector<32x1xf32> to vector<32x256xf32>
    %7 = arith.addf %4, %6 : vector<32x256xf32>
    %cst_7 = arith.constant 0.000000e+00 : f32
    %8 = vector.broadcast %cst_7 : f32 to vector<32x256xf32>
    %9 = arith.maximumf %7, %8 : vector<32x256xf32>
    %c0_8 = arith.constant 0 : index
    %c0_9 = arith.constant 0 : index
    %10 = vector.load %arg5[%c0_8, %c0_9] : memref<16x32xbf16, #tpu.memory_space<vmem>>, vector<16x32xbf16>
    %11 = arith.truncf %9 : vector<32x256xf32> to vector<32x256xbf16>
    %cst_10 = arith.constant dense<0.000000e+00> : vector<16x256xf32>
    %12 = tpu.matmul %10, %11, %cst_10 {dimension_numbers = #tpu.dot_dimension_numbers<[1], [0], [0], [1], [0, 0, 1, 1], [], []>} : vector<16x32xbf16>, vector<32x256xbf16>, vector<16x256xf32> -> vector<16x256xf32>
    %13 = arith.addf %2, %12 : vector<16x256xf32>
    %c0_11 = arith.constant 0 : index
    %c0_12 = arith.constant 0 : index
    %14 = vector.load %arg6[%c0_11, %c0_12] : memref<16x1xf32, #tpu.memory_space<vmem>>, vector<16x1xf32>
    %15 = vector.broadcast %14 : vector<16x1xf32> to vector<16x256xf32>
    %16 = arith.addf %13, %15 : vector<16x256xf32>
    %c0_13 = arith.constant 0 : index
    %c0_14 = arith.constant 0 : index
    %c0_15 = arith.constant 0 : index
    %17 = vector.load %arg7[%c0_13, %c0_14, %c0_15] : memref<1x16x256xf32, #tpu.memory_space<vmem>>, vector<1x16x256xf32>
    %18 = vector.shape_cast %17 : vector<1x16x256xf32> to vector<16x256xf32>
    %19 = vector.shape_cast %16 : vector<16x256xf32> to vector<1x16x256xf32>
    tpu.vector_store %arg7[%c0_13, %c0_14, %c0_15], %19 {strides = array<i32>} : memref<1x16x256xf32, #tpu.memory_space<vmem>>, vector<1x16x256xf32>,
    return
  }
  func.func @transform_0(%arg0: i32, %arg1: i32) -> (i32, i32, i32) {
    %c0_i32 = arith.constant 0 : i32
    %c0_i32_0 = arith.constant 0 : i32
    return %arg0, %c0_i32, %arg1 : i32, i32, i32
  }
  func.func @transform_1(%arg0: i32, %arg1: i32) -> (i32, i32) {
    %c0_i32 = arith.constant 0 : i32
    %c0_i32_0 = arith.constant 0 : i32
    %c0_i32_1 = arith.constant 0 : i32
    return %c0_i32, %c0_i32_0 : i32, i32
  }
  func.func @transform_2(%arg0: i32, %arg1: i32) -> (i32, i32) {
    %c0_i32 = arith.constant 0 : i32
    %c0_i32_0 = arith.constant 0 : i32
    %c0_i32_1 = arith.constant 0 : i32
    return %c0_i32, %c0_i32_0 : i32, i32
  }
  func.func @transform_3(%arg0: i32, %arg1: i32) -> (i32, i32) {
    %c0_i32 = arith.constant 0 : i32
    %c0_i32_0 = arith.constant 0 : i32
    %c0_i32_1 = arith.constant 0 : i32
    return %c0_i32, %c0_i32_0 : i32, i32
  }
  func.func @transform_4(%arg0: i32, %arg1: i32) -> (i32, i32) {
    %c0_i32 = arith.constant 0 : i32
    %c0_i32_0 = arith.constant 0 : i32
    %c0_i32_1 = arith.constant 0 : i32
    return %c0_i32, %c0_i32_0 : i32, i32
  }
  func.func @transform_5(%arg0: i32, %arg1: i32) -> (i32, i32, i32) {
    %c0_i32 = arith.constant 0 : i32
    %c0_i32_0 = arith.constant 0 : i32
    return %arg0, %c0_i32, %arg1 : i32, i32, i32
  }
}

module attributes {stable_mosaic.version = 11 : i64} {
  func.func @kernel(%arg0: i32, %arg1: i32, %arg2: memref<1x16x256xbf16, #tpu.memory_space<vmem>>, %arg3: memref<32x16xbf16, #tpu.memory_space<vmem>>, %arg4: memref<32x1xf32, #tpu.memory_space<vmem>>, %arg5: memref<16x32xbf16, #tpu.memory_space<vmem>>, %arg6: memref<16x1xf32, #tpu.memory_space<vmem>>, %arg7: memref<1x16x256xf32, #tpu.memory_space<vmem>>) attributes {dimension_semantics = [#tpu.dimension_semantics<parallel>, #tpu.dimension_semantics<parallel>], iteration_bounds = array<i64: 2, 1>, scalar_prefetch = 0 : i64, scratch_operands = 0 : i64, tpu.core_type = #tpu.core_type<tc>, window_params = [{transform_indices = @transform_0, window_bounds = array<i64: 1, 16, 256>}, {pipeline_mode = #tpu.pipeline_mode<synchronous>, transform_indices = @transform_1, window_bounds = array<i64: 32, 16>}, {pipeline_mode = #tpu.pipeline_mode<synchronous>, transform_indices = @transform_2, window_bounds = array<i64: 32, 1>}, {pipeline_mode = #tpu.pipeline_mode<synchronous>, transform_indices = @transform_3, window_bounds = array<i64: 16, 32>}, {pipeline_mode = #tpu.pipeline_mode<synchronous>, transform_indices = @transform_4, window_bounds = array<i64: 16, 1>}, {transform_indices = @transform_5, window_bounds = array<i64: 1, 16, 256>}]} {
    %c0 = arith.constant 0 : index
    %c0_0 = arith.constant 0 : index
    %c0_1 = arith.constant 0 : index
    %0 = vector.load %arg2[%c0, %c0_0, %c0_1] : memref<1x16x256xbf16, #tpu.memory_space<vmem>>, vector<1x16x256xbf16>
    %1 = vector.shape_cast %0 : vector<1x16x256xbf16> to vector<16x256xbf16>
    %cst = arith.constant 0.000000e+00 : f32
    %2 = vector.broadcast %cst : f32 to vector<16x256xf32>
    %c0_2 = arith.constant 0 : index
    %c0_3 = arith.constant 0 : index
    %3 = vector.load %arg3[%c0_2, %c0_3] : memref<32x16xbf16, #tpu.memory_space<vmem>>, vector<32x16xbf16>
    %cst_4 = arith.constant dense<0.000000e+00> : vector<32x256xf32>
    %4 = tpu.matmul %3, %1, %cst_4 {dimension_numbers = #tpu.dot_dimension_numbers<[1], [0], [0], [1], [0, 0, 1, 1], [], []>} : vector<32x16xbf16>, vector<16x256xbf16>, vector<32x256xf32> -> vector<32x256xf32>
    %c0_5 = arith.constant 0 : index
    %c0_6 = arith.constant 0 : index
    %5 = vector.load %arg4[%c0_5, %c0_6] : memref<32x1xf32, #tpu.memory_space<vmem>>, vector<32x1xf32>
    %6 = vector.broadcast %5 : vector<32x1xf32> to vector<32x256xf32>
    %7 = arith.addf %4, %6 : vector<32x256xf32>
    %cst_7 = arith.constant 0.000000e+00 : f32
    %8 = vector.broadcast %cst_7 : f32 to vector<32x256xf32>
    %9 = arith.maximumf %7, %8 : vector<32x256xf32>
    %c0_8 = arith.constant 0 : index
    %c0_9 = arith.constant 0 : index
    %10 = vector.load %arg5[%c0_8, %c0_9] : memref<16x32xbf16, #tpu.memory_space<vmem>>, vector<16x32xbf16>
    %11 = arith.truncf %9 : vector<32x256xf32> to vector<32x256xbf16>
    %cst_10 = arith.constant dense<0.000000e+00> : vector<16x256xf32>
    %12 = tpu.matmul %10, %11, %cst_10 {dimension_numbers = #tpu.dot_dimension_numbers<[1], [0], [0], [1], [0, 0, 1, 1], [], []>} : vector<16x32xbf16>, vector<32x256xbf16>, vector<16x256xf32> -> vector<16x256xf32>
    %13 = arith.addf %2, %12 : vector<16x256xf32>
    %c0_11 = arith.constant 0 : index
    %c0_12 = arith.constant 0 : index
    %14 = vector.load %arg6[%c0_11, %c0_12] : memref<16x1xf32, #tpu.memory_space<vmem>>, vector<16x1xf32>
    %15 = vector.broadcast %14 : vector<16x1xf32> to vector<16x256xf32>
    %16 = arith.addf %13, %15 : vector<16x256xf32>
    %c0_13 = arith.constant 0 : index
    %c0_14 = arith.constant 0 : index
    %c0_15 = arith.constant 0 : index
    %17 = vector.load %arg7[%c0_13, %c0_14, %c0_15] : memref<1x16x256xf32, #tpu.memory_space<vmem>>, vector<1x16x256xf32>
    %18 = vector.shape_cast %17 : vector<1x16x256xf32> to vector<16x256xf32>
    %19 = vector.shape_cast %16 : vector<16x256xf32> to vector<1x16x256xf32>
    tpu.vector_store %arg7[%c0_13, %c0_14, %c0_15], %19 {strides = array<i32>} : memref<1x16x256xf32, #tpu.memory_space<vmem>>, vector<1x16x256xf32>,
    return
  }
  func.func @transform_0(%arg0: i32, %arg1: i32) -> (i32, i32, i32) {
    %c0_i32 = arith.constant 0 : i32
    %c0_i32_0 = arith.constant 0 : i32
    return %arg0, %c0_i32, %arg1 : i32, i32, i32
  }
  func.func @transform_1(%arg0: i32, %arg1: i32) -> (i32, i32) {
    %c0_i32 = arith.constant 0 : i32
    %c0_i32_0 = arith.constant 0 : i32
    %c0_i32_1 = arith.constant 0 : i32
    return %c0_i32, %c0_i32_0 : i32, i32
  }
  func.func @transform_2(%arg0: i32, %arg1: i32) -> (i32, i32) {
    %c0_i32 = arith.constant 0 : i32
    %c0_i32_0 = arith.constant 0 : i32
    %c0_i32_1 = arith.constant 0 : i32
    return %c0_i32, %c0_i32_0 : i32, i32
  }
  func.func @transform_3(%arg0: i32, %arg1: i32) -> (i32, i32) {
    %c0_i32 = arith.constant 0 : i32
    %c0_i32_0 = arith.constant 0 : i32
    %c0_i32_1 = arith.constant 0 : i32
    return %c0_i32, %c0_i32_0 : i32, i32
  }
  func.func @transform_4(%arg0: i32, %arg1: i32) -> (i32, i32) {
    %c0_i32 = arith.constant 0 : i32
    %c0_i32_0 = arith.constant 0 : i32
    %c0_i32_1 = arith.constant 0 : i32
    return %c0_i32, %c0_i32_0 : i32, i32
  }
  func.func @transform_5(%arg0: i32, %arg1: i32) -> (i32, i32, i32) {
    %c0_i32 = arith.constant 0 : i32
    %c0_i32_0 = arith.constant 0 : i32
    return %arg0, %c0_i32, %arg1 : i32, i32, i32
  }
}

</mosaic_0001>

<bundles_post_ra>
// kernel: tpu_custom_call.1
= control target key start
LH: loop header
LB: loop body
LE: loop exit
PB: predicated region body
PF: predicated region fallthrough
CT: control target
= control target key end

     0   :  { %10 = vsyncpa [#allocation3], 0  ;;  %s858_s0 = inlined_call_operand.vmem [shape: bf16[2,16,256], index: 0, kind: input, shape index: {}]   ;;  %s859_s1 = inlined_call_operand.vmem [shape: bf16[32,16], index: 1, kind: input, shape index: {}]   ;;  %s860_s2 = inlined_call_operand.vmem [shape: f32[32,1], index: 2, kind: input, shape index: {}]   ;;  %s861_s3 = inlined_call_operand.vmem [shape: bf16[16,32], index: 3, kind: input, shape index: {}]   ;;  %s862_s4 = inlined_call_operand.vmem [shape: f32[16,1], index: 4, kind: input, shape index: {}]   ;;  %s863_s5 = inlined_call_operand.hbm [shape: f32[2,16,256], index: 5, kind: output, shape index: {}]  }
   0x1   :  { %12 = vsyncpa [#allocation3 + $0x1], 0  ;;  %s734_s18 = smov 0   ;;  %s736_s19 = smov 0  }
   0x2   :  { %s738_s20 = smov 0   ;;  %s740_s21 = smov 0  }
   0x3   :  { %s742_s22 = smov 0   ;;  %s744_s23 = smov 0  }
   0x4 LB: > { %s514_s24 = sadd.s32 4294967295, %s699_s23   ;;  %s515_s25 = sadd.s32 4294967294, %s699_s23   ;;  %s699_s23 = sphi %s744_s23, %s18_s23   ;;  %s695_s22 = sphi %s742_s22, %s870_s22   ;;  %s691_s21 = sphi %s740_s21, %s869_s21   ;;  %s687_s20 = sphi %s738_s20, %s868_s20   ;;  %s683_s19 = sphi %s736_s19, %s867_s19   ;;  %s679_s18 = sphi %s734_s18, %s866_s18  }
   0x5   : > { %s30_s26 = sadd.s32 1, %s695_s22  ;;  %s151_s27 = sadd.s32 1, %s687_s20 }
   0x6   : > { %p32_p0 = scmp.ge.s32.totalorder %s30_s26, 2  ;;  %p161_p1 = scmp.ne.s32.totalorder %s687_s20, %s683_s19 }
   0x7   : > { %p162_p2 = scmp.eq.s32.totalorder %s514_s24, 1  ;;  %p167_p3 = scmp.ne.s32.totalorder %s683_s19, %s679_s18 }
   0x8   : > { %s872_s26 = smov (%p32_p0, %s30_s26), 0  ;;  %p168_p5 = scmp.eq.s32.totalorder %s515_s25, 1 }
   0x9   : > { %p774_p4 = por %p162_p2, %p161_p1  ;;  %s146_s29 = ssub.s32 %s695_s22, %s872_s26 }
   0xa   : > { %p518_p6 = scmp.ge.s32.totalorder %s699_s23, 1  ;;  %p149_p7 = scmp.eq.s32.totalorder %s146_s29, 0 }
   0xb   : > { %p781_p8 = por %p168_p5, %p167_p3  ;;  %p211_p9 = scmp.lt.s32.totalorder %s699_s23, 3 }
   0xc   : > { %s787_s6 = scalar_select %p149_p7, %s687_s20, %s151_s27  }
   0xd   : > { %p212_p10 = pnand %p518_p6, %p211_p9 }
   0xe   : > { %p244_p11 = scmp.lt.s32.totalorder (!%p212_p10), %s691_s21, 1  ;;  %s559_s17 = sshll.u32 (!%p212_p10), %s691_s21, 5 }
   0xf   : > { %215 = sbr.rel (%p212_p10) target bundleno = 341 (0x155), region = 40  ;;  %s431_s29 = scalar_lea.hbm (!%p212_p10), %s863_s5, %s559_s17 }
  0x10   : > { %s434_s8 = sshll.u32 (!%p212_p10), %s431_s29, 4  ;;  %s641_s13 = scalar_lea.hbm (!%p212_p10), %s863_s5, 64  ;;  %s435_s8 = int_to_ptr.hbm [resolvable:$true] %s434_s8 }
  0x11   : > { %s635_s9 = sshra.s32 (!%p212_p10), %s435_s8, 4  ;;  %s636_s9 = int_to_ptr.hbm [resolvable:$true] %s635_s9 }
  0x12   : > { %s637_s10 = scalar_lea.hbm (!%p212_p10), %s636_s9, 32  ;;  %p642_p1 = scmp.lt.s32.totalorder (!%p212_p10), %s636_s9, %s863_s5 }
  0x13   : > { %p638_p12 = scmp.ne.s32.totalorder (!%p212_p10), %s636_s9, %s637_s10  ;;  %p643_p2 = scmp.lt.s32.totalorder (!%p212_p10), %s641_s13, %s637_s10 }
  0x14   : > { %v261_v0 = vld [vmem:[%s860_s2] sm:$0xff]  ;;  %v701_v1 = vmov 0   ;;  %v263_v2 = vld [vmem:[%s860_s2 + $0x10] sm:$0xff]  ;;  %s245_s11 = scalar_select %p244_p11, %s691_s21, 1  ;;  %v262_v8 = vld [vmem:[%s860_s2 + $0x8] sm:$0xff]  ;;  %vm305_vm0 = vcmask 130048  }
  0x15   : > { %619 = vset.pattern.permute.xlu1 %v701_v1  ;;  %618 = vset.pattern.permute.xlu0 %v701_v1  ;;  %v556_v10 = vld [vmem:[%s859_s1] sm:$0xff]  ;;  %v264_v11 = vld [vmem:[%s860_s2 + $0x18] sm:$0xff]  ;;  %v557_v12 = vld [vmem:[%s859_s1 + $0x8] sm:$0xff]  ;;  %vm381_vm1 = vcmask 261120   ;;  %p639_p13 = pnand %p638_p12, %p774_p4  ;;  %p644_p3 = por %p643_p2, %p642_p1 }
  0x16   : > { %267 = vperm.xlu1 %619, %v261_v0   ;;  %277 = vperm.xlu0 %618, %v263_v2   ;;  %s553_s12 = sshll.u32 %s245_s11, 4  ;;  %v364_v15 = vld [vmem:[%s862_s4] sm:$0xff]  ;;  %v365_v19 = vld [vmem:[%s862_s4 + $0x8] sm:$0xff] }
  0x17   : > { %620 = vset.pattern.permute.xlu2 %v701_v1  ;;  %s251_s15 = scalar_lea.vmem %s858_s0, %s553_s12  ;;  %v558_v47 = vld [vmem:[%s861_s3] sm:$0xff]  ;;  %p640_p0 = pneg %p639_p13 }
  0x18   : > { %v532_v3 = vld [vmem:[%s251_s15] sm:$0xf]  ;;  %v555_v4 = vld [vmem:[%s251_s15 + $0x4] sm:$0xf0]  ;;  %v554_v5 = vld [vmem:[%s251_s15 + $0x4] sm:$0xf]  ;;  %368 = vperm.xlu2 %620, %v364_v15  }
  0x19   : > { %v533_v6 = vor.u32 %v555_v4, %v532_v3  ;;  %v534_v7 = vld [vmem:[%s251_s15 + $0x8] sm:$0xf0]  ;;  %s240_s15 = sand.u32 1, %s683_s19   ;;  %p645_p5 = pnand %p644_p3, %p640_p0 }
  0x1a   : > { %v537_v9 = vor.u32 %v554_v5, %v534_v7  ;;  %s519_s16 = sshll.u32 %s240_s15, 5  ;;  %s418_s21 = scalar_lea.sflag [#allocation3], %s240_s15 }
  0x1b   : > { %319 = vmatpush.bf16.msra.mxu0 %v533_v6  ;;  %s242_s24 = scalar_lea.vmem [#allocation2], %s519_s16 }
  0x1c   : > { %338 = vmatpush.bf16.msra.mxu1 %v537_v9  ;;  %s432_s7 = sshll.u32 %s242_s24, 4  ;;  %s433_s7 = int_to_ptr.vmem [resolvable:$true] %s432_s7 }
  0x1e   : > { %272 = vperm.xlu1 %619, %v262_v8   ;;  %282 = vperm.xlu0 %618, %v264_v11  }
  0x1f   : > { %538 = vmatmul.msk.bf16.vlgmr.msra.gmra.mxu0 %vm305_vm0, %v556_v10  ;;  %540 = vmatmul.msk.bf16.vlgmr.msra.gmra.mxu1 %vm305_vm0, %v556_v10 }
  0x20   : > { %373 = vperm.xlu2 %620, %v365_v19  }
  0x2f   : > { %539 = vmatmul.msk.bf16.gmra.mxu0 %vm305_vm0, %v557_v12  ;;  %541 = vmatmul.msk.bf16.gmra.mxu1 %vm305_vm0, %v557_v12 }
  0x72   : > { %v369_v48 = vpop.permute.xlu2 %368 }
  0x7a   : > { %v374_v53 = vpop.permute.xlu2 %373 }
  0x88   : > { %v268_v18 = vpop.permute.xlu1 %267  ;;  %v278_v20 = vpop.permute.xlu0 %277 }
  0x90   : > { %v273_v23 = vpop.permute.xlu1 %272  ;;  %v283_v25 = vpop.permute.xlu0 %282 }
  0x9c   : > { %v321_v13 = vpop.f32.mrf.mxu0  ;;  %v340_v14 = vpop.f32.mrf.mxu1 }
  0x9d   : > { %v322_v33 = vadd.f32 %v321_v13, %v268_v18  ;;  %v341_v36 = vadd.f32 %v340_v14, %v268_v18 }
  0x9f   : > { %v350_v43 = vmax.f32 %v322_v33, 0.0  ;;  %v351_v44 = vmax.f32 %v341_v36, 0.0 }
  0xa4   : > { %v323_v16 = vpop.f32.mrf.mxu0  ;;  %v342_v17 = vpop.f32.mrf.mxu1 }
  0xa5   : > { %v324_v28 = vadd.f32 %v323_v16, %v273_v23  ;;  %v343_v31 = vadd.f32 %v342_v17, %v273_v23 }
  0xa7   : > { %v352_v39 = vmax.f32 %v324_v28, 0.0  ;;  %v353_v41 = vmax.f32 %v343_v31, 0.0 }
  0xa9   : > { %v360_v45 = vpack.c.bf16 %v352_v39, %v350_v43  ;;  %v361_v46 = vpack.c.bf16 %v353_v41, %v351_v44 }
  0xac   : > { %v326_v21 = vpop.f32.mrf.mxu0  ;;  %v345_v22 = vpop.f32.mrf.mxu1 }
  0xad   : > { %v327_v24 = vadd.f32 %v326_v21, %v278_v20  ;;  %v346_v26 = vadd.f32 %v345_v22, %v278_v20 }
  0xaf   : > { %v354_v34 = vmax.f32 %v327_v24, 0.0  ;;  %v355_v37 = vmax.f32 %v346_v26, 0.0 }
  0xb4   : > { %v328_v27 = vpop.f32.mrf.mxu0  ;;  %v347_v30 = vpop.f32.mrf.mxu1 }
  0xb5   : > { %v329_v29 = vadd.f32 %v328_v27, %v283_v25  ;;  %v348_v32 = vadd.f32 %v347_v30, %v283_v25 }
  0xb7   : > { %v356_v35 = vmax.f32 %v329_v29, 0.0  ;;  %v357_v38 = vmax.f32 %v348_v32, 0.0 }
  0xb9   : > { %v362_v40 = vpack.c.bf16 %v356_v35, %v354_v34  ;;  %v363_v42 = vpack.c.bf16 %v357_v38, %v355_v37 }
  0xbb   : > { %391 = vmatpush.bf16.msra.mxu2 %v362_v40  ;;  %405 = vmatpush.bf16.msra.mxu3 %v363_v42 }
  0xbf   : > { %392 = vmatpush.bf16.msra.mxu2 %v360_v45  ;;  %406 = vmatpush.bf16.msra.mxu3 %v361_v46 }
  0xc2   : > { %546 = vmatmul.msk.bf16.vlgmr.msra.gmra.mxu2 %vm381_vm1, %v558_v47  ;;  %547 = vmatmul.msk.bf16.vlgmr.msra.gmra.mxu3 %vm381_vm1, %v558_v47 }
 0x145   : > { %v394_v49 = vpop.f32.mrf.mxu2  ;;  %v408_v51 = vpop.f32.mrf.mxu3 }
 0x146   : > { %v395_v50 = vadd.f32 %v394_v49, %v369_v48  ;;  %v409_v52 = vadd.f32 %v408_v51, %v369_v48 }
 0x148   : > { %413 = vst [vmem:[%s242_s24] sm:$0xff] %v395_v50 }
 0x149   : > { %414 = vst [vmem:[%s242_s24 + $0x8] sm:$0xff] %v409_v52 }
 0x14d   : > { %v396_v54 = vpop.f32.mrf.mxu2  ;;  %v410_v56 = vpop.f32.mrf.mxu3 }
 0x14e   : > { %v397_v55 = vadd.f32 %v396_v54, %v374_v53  ;;  %v411_v57 = vadd.f32 %v410_v56, %v374_v53 }
 0x150   : > { %415 = vst [vmem:[%s242_s24 + $0x10] sm:$0xff] %v397_v55 }
 0x151   : > { %416 = vst [vmem:[%s242_s24 + $0x18] sm:$0xff] %v411_v57 }
 0x152   : > { %648 = shalt.err (!%p645_p5)
}
 0x153   : > { %s702_s15 = smov 256   ;;  %s703_s17 = smov 16  }
 0x154   : > { %560 = dma.vmem_to_hbm [thread:$0]  (%p774_p4), %s433_s7, 512, %s435_s8, %s418_s21, %s702_s15, %s702_s15, %s703_s17  }
 0x155 PF: > { %p566_p6 = scmp.ge.s32.totalorder %s699_s23, 2  ;;  %s449_s24 = sand.u32 1, %s679_s18  }
 0x156   : > { %s450_s25 = scalar_lea.sflag [#allocation3], %s449_s24 }
 0x157   : > { %p563_p7 = pnand %p566_p6, %p781_p8 }
 0x159   : > { %p564_p9 = pneg %p563_p7 }
 0x15b   : > { %674 = dma.done.wait (%p564_p9), %s450_s25, 512  }
 0x15c   : > { %676 = vsyncadd (%p564_p9), %s450_s25, 4294966784  ;;  %s18_s23 = sadd.s32 1, %s699_s23   ;;  %s866_s18 = smov %s683_s19 }
 0x15d   : > { %p15_p10 = scmp.ge.s32.totalorder %s18_s23, 4   ;;  %s867_s19 = smov %s687_s20 }
 0x15e   : > { %s868_s20 = smov %s787_s6  ;;  %s869_s21 = smov %s695_s22 }
 0x15f   : > { %s870_s22 = smov %s872_s26  ;;  %17 = sbr.rel (!%p15_p10) target bundleno = 4 (0x4), region = 75 }
 0x164   :  { %456 = vsyncpa [#allocation3], 1 }
 0x165   :  { %458 = vsyncpa [#allocation3 + $0x1], 1 }

// kernel: tpu_custom_call.1
= control target key start
LH: loop header
LB: loop body
LE: loop exit
PB: predicated region body
PF: predicated region fallthrough
CT: control target
= control target key end

     0   :  { %10 = vsyncpa [#allocation3], 0  ;;  %s858_s0 = inlined_call_operand.vmem [shape: bf16[2,16,256], index: 0, kind: input, shape index: {}]   ;;  %s859_s1 = inlined_call_operand.vmem [shape: bf16[32,16], index: 1, kind: input, shape index: {}]   ;;  %s860_s2 = inlined_call_operand.vmem [shape: f32[32,1], index: 2, kind: input, shape index: {}]   ;;  %s861_s3 = inlined_call_operand.vmem [shape: bf16[16,32], index: 3, kind: input, shape index: {}]   ;;  %s862_s4 = inlined_call_operand.vmem [shape: f32[16,1], index: 4, kind: input, shape index: {}]   ;;  %s863_s5 = inlined_call_operand.hbm [shape: f32[2,16,256], index: 5, kind: output, shape index: {}]  }
   0x1   :  { %12 = vsyncpa [#allocation3 + $0x1], 0  ;;  %s734_s18 = smov 0   ;;  %s736_s19 = smov 0  }
   0x2   :  { %s738_s20 = smov 0   ;;  %s740_s21 = smov 0  }
   0x3   :  { %s742_s22 = smov 0   ;;  %s744_s23 = smov 0  }
   0x4 LB: > { %s514_s24 = sadd.s32 4294967295, %s699_s23   ;;  %s515_s25 = sadd.s32 4294967294, %s699_s23   ;;  %s699_s23 = sphi %s744_s23, %s18_s23   ;;  %s695_s22 = sphi %s742_s22, %s870_s22   ;;  %s691_s21 = sphi %s740_s21, %s869_s21   ;;  %s687_s20 = sphi %s738_s20, %s868_s20   ;;  %s683_s19 = sphi %s736_s19, %s867_s19   ;;  %s679_s18 = sphi %s734_s18, %s866_s18  }
   0x5   : > { %s30_s26 = sadd.s32 1, %s695_s22  ;;  %s151_s27 = sadd.s32 1, %s687_s20 }
   0x6   : > { %p32_p0 = scmp.ge.s32.totalorder %s30_s26, 2  ;;  %p161_p1 = scmp.ne.s32.totalorder %s687_s20, %s683_s19 }
   0x7   : > { %p162_p2 = scmp.eq.s32.totalorder %s514_s24, 1  ;;  %p167_p3 = scmp.ne.s32.totalorder %s683_s19, %s679_s18 }
   0x8   : > { %s872_s26 = smov (%p32_p0, %s30_s26), 0  ;;  %p168_p5 = scmp.eq.s32.totalorder %s515_s25, 1 }
   0x9   : > { %p774_p4 = por %p162_p2, %p161_p1  ;;  %s146_s29 = ssub.s32 %s695_s22, %s872_s26 }
   0xa   : > { %p518_p6 = scmp.ge.s32.totalorder %s699_s23, 1  ;;  %p149_p7 = scmp.eq.s32.totalorder %s146_s29, 0 }
   0xb   : > { %p781_p8 = por %p168_p5, %p167_p3  ;;  %p211_p9 = scmp.lt.s32.totalorder %s699_s23, 3 }
   0xc   : > { %s787_s6 = scalar_select %p149_p7, %s687_s20, %s151_s27  }
   0xd   : > { %p212_p10 = pnand %p518_p6, %p211_p9 }
   0xe   : > { %p244_p11 = scmp.lt.s32.totalorder (!%p212_p10), %s691_s21, 1  ;;  %s559_s17 = sshll.u32 (!%p212_p10), %s691_s21, 5 }
   0xf   : > { %215 = sbr.rel (%p212_p10) target bundleno = 341 (0x155), region = 40  ;;  %s431_s29 = scalar_lea.hbm (!%p212_p10), %s863_s5, %s559_s17 }
  0x10   : > { %s434_s8 = sshll.u32 (!%p212_p10), %s431_s29, 4  ;;  %s641_s13 = scalar_lea.hbm (!%p212_p10), %s863_s5, 64  ;;  %s435_s8 = int_to_ptr.hbm [resolvable:$true] %s434_s8 }
  0x11   : > { %s635_s9 = sshra.s32 (!%p212_p10), %s435_s8, 4  ;;  %s636_s9 = int_to_ptr.hbm [resolvable:$true] %s635_s9 }
  0x12   : > { %s637_s10 = scalar_lea.hbm (!%p212_p10), %s636_s9, 32  ;;  %p642_p1 = scmp.lt.s32.totalorder (!%p212_p10), %s636_s9, %s863_s5 }
  0x13   : > { %p638_p12 = scmp.ne.s32.totalorder (!%p212_p10), %s636_s9, %s637_s10  ;;  %p643_p2 = scmp.lt.s32.totalorder (!%p212_p10), %s641_s13, %s637_s10 }
  0x14   : > { %v261_v0 = vld [vmem:[%s860_s2] sm:$0xff]  ;;  %v701_v1 = vmov 0   ;;  %v263_v2 = vld [vmem:[%s860_s2 + $0x10] sm:$0xff]  ;;  %s245_s11 = scalar_select %p244_p11, %s691_s21, 1  ;;  %v262_v8 = vld [vmem:[%s860_s2 + $0x8] sm:$0xff]  ;;  %vm305_vm0 = vcmask 130048  }
  0x15   : > { %619 = vset.pattern.permute.xlu1 %v701_v1  ;;  %618 = vset.pattern.permute.xlu0 %v701_v1  ;;  %v556_v10 = vld [vmem:[%s859_s1] sm:$0xff]  ;;  %v264_v11 = vld [vmem:[%s860_s2 + $0x18] sm:$0xff]  ;;  %v557_v12 = vld [vmem:[%s859_s1 + $0x8] sm:$0xff]  ;;  %vm381_vm1 = vcmask 261120   ;;  %p639_p13 = pnand %p638_p12, %p774_p4  ;;  %p644_p3 = por %p643_p2, %p642_p1 }
  0x16   : > { %267 = vperm.xlu1 %619, %v261_v0   ;;  %277 = vperm.xlu0 %618, %v263_v2   ;;  %s553_s12 = sshll.u32 %s245_s11, 4  ;;  %v364_v15 = vld [vmem:[%s862_s4] sm:$0xff]  ;;  %v365_v19 = vld [vmem:[%s862_s4 + $0x8] sm:$0xff] }
  0x17   : > { %620 = vset.pattern.permute.xlu2 %v701_v1  ;;  %s251_s15 = scalar_lea.vmem %s858_s0, %s553_s12  ;;  %v558_v47 = vld [vmem:[%s861_s3] sm:$0xff]  ;;  %p640_p0 = pneg %p639_p13 }
  0x18   : > { %v532_v3 = vld [vmem:[%s251_s15] sm:$0xf]  ;;  %v555_v4 = vld [vmem:[%s251_s15 + $0x4] sm:$0xf0]  ;;  %v554_v5 = vld [vmem:[%s251_s15 + $0x4] sm:$0xf]  ;;  %368 = vperm.xlu2 %620, %v364_v15  }
  0x19   : > { %v533_v6 = vor.u32 %v555_v4, %v532_v3  ;;  %v534_v7 = vld [vmem:[%s251_s15 + $0x8] sm:$0xf0]  ;;  %s240_s15 = sand.u32 1, %s683_s19   ;;  %p645_p5 = pnand %p644_p3, %p640_p0 }
  0x1a   : > { %v537_v9 = vor.u32 %v554_v5, %v534_v7  ;;  %s519_s16 = sshll.u32 %s240_s15, 5  ;;  %s418_s21 = scalar_lea.sflag [#allocation3], %s240_s15 }
  0x1b   : > { %319 = vmatpush.bf16.msra.mxu0 %v533_v6  ;;  %s242_s24 = scalar_lea.vmem [#allocation2], %s519_s16 }
  0x1c   : > { %338 = vmatpush.bf16.msra.mxu1 %v537_v9  ;;  %s432_s7 = sshll.u32 %s242_s24, 4  ;;  %s433_s7 = int_to_ptr.vmem [resolvable:$true] %s432_s7 }
  0x1e   : > { %272 = vperm.xlu1 %619, %v262_v8   ;;  %282 = vperm.xlu0 %618, %v264_v11  }
  0x1f   : > { %538 = vmatmul.msk.bf16.vlgmr.msra.gmra.mxu0 %vm305_vm0, %v556_v10  ;;  %540 = vmatmul.msk.bf16.vlgmr.msra.gmra.mxu1 %vm305_vm0, %v556_v10 }
  0x20   : > { %373 = vperm.xlu2 %620, %v365_v19  }
  0x2f   : > { %539 = vmatmul.msk.bf16.gmra.mxu0 %vm305_vm0, %v557_v12  ;;  %541 = vmatmul.msk.bf16.gmra.mxu1 %vm305_vm0, %v557_v12 }
  0x72   : > { %v369_v48 = vpop.permute.xlu2 %368 }
  0x7a   : > { %v374_v53 = vpop.permute.xlu2 %373 }
  0x88   : > { %v268_v18 = vpop.permute.xlu1 %267  ;;  %v278_v20 = vpop.permute.xlu0 %277 }
  0x90   : > { %v273_v23 = vpop.permute.xlu1 %272  ;;  %v283_v25 = vpop.permute.xlu0 %282 }
  0x9c   : > { %v321_v13 = vpop.f32.mrf.mxu0  ;;  %v340_v14 = vpop.f32.mrf.mxu1 }
  0x9d   : > { %v322_v33 = vadd.f32 %v321_v13, %v268_v18  ;;  %v341_v36 = vadd.f32 %v340_v14, %v268_v18 }
  0x9f   : > { %v350_v43 = vmax.f32 %v322_v33, 0.0  ;;  %v351_v44 = vmax.f32 %v341_v36, 0.0 }
  0xa4   : > { %v323_v16 = vpop.f32.mrf.mxu0  ;;  %v342_v17 = vpop.f32.mrf.mxu1 }
  0xa5   : > { %v324_v28 = vadd.f32 %v323_v16, %v273_v23  ;;  %v343_v31 = vadd.f32 %v342_v17, %v273_v23 }
  0xa7   : > { %v352_v39 = vmax.f32 %v324_v28, 0.0  ;;  %v353_v41 = vmax.f32 %v343_v31, 0.0 }
  0xa9   : > { %v360_v45 = vpack.c.bf16 %v352_v39, %v350_v43  ;;  %v361_v46 = vpack.c.bf16 %v353_v41, %v351_v44 }
  0xac   : > { %v326_v21 = vpop.f32.mrf.mxu0  ;;  %v345_v22 = vpop.f32.mrf.mxu1 }
  0xad   : > { %v327_v24 = vadd.f32 %v326_v21, %v278_v20  ;;  %v346_v26 = vadd.f32 %v345_v22, %v278_v20 }
  0xaf   : > { %v354_v34 = vmax.f32 %v327_v24, 0.0  ;;  %v355_v37 = vmax.f32 %v346_v26, 0.0 }
  0xb4   : > { %v328_v27 = vpop.f32.mrf.mxu0  ;;  %v347_v30 = vpop.f32.mrf.mxu1 }
  0xb5   : > { %v329_v29 = vadd.f32 %v328_v27, %v283_v25  ;;  %v348_v32 = vadd.f32 %v347_v30, %v283_v25 }
  0xb7   : > { %v356_v35 = vmax.f32 %v329_v29, 0.0  ;;  %v357_v38 = vmax.f32 %v348_v32, 0.0 }
  0xb9   : > { %v362_v40 = vpack.c.bf16 %v356_v35, %v354_v34  ;;  %v363_v42 = vpack.c.bf16 %v357_v38, %v355_v37 }
  0xbb   : > { %391 = vmatpush.bf16.msra.mxu2 %v362_v40  ;;  %405 = vmatpush.bf16.msra.mxu3 %v363_v42 }
  0xbf   : > { %392 = vmatpush.bf16.msra.mxu2 %v360_v45  ;;  %406 = vmatpush.bf16.msra.mxu3 %v361_v46 }
  0xc2   : > { %546 = vmatmul.msk.bf16.vlgmr.msra.gmra.mxu2 %vm381_vm1, %v558_v47  ;;  %547 = vmatmul.msk.bf16.vlgmr.msra.gmra.mxu3 %vm381_vm1, %v558_v47 }
 0x145   : > { %v394_v49 = vpop.f32.mrf.mxu2  ;;  %v408_v51 = vpop.f32.mrf.mxu3 }
 0x146   : > { %v395_v50 = vadd.f32 %v394_v49, %v369_v48  ;;  %v409_v52 = vadd.f32 %v408_v51, %v369_v48 }
 0x148   : > { %413 = vst [vmem:[%s242_s24] sm:$0xff] %v395_v50 }
 0x149   : > { %414 = vst [vmem:[%s242_s24 + $0x8] sm:$0xff] %v409_v52 }
 0x14d   : > { %v396_v54 = vpop.f32.mrf.mxu2  ;;  %v410_v56 = vpop.f32.mrf.mxu3 }
 0x14e   : > { %v397_v55 = vadd.f32 %v396_v54, %v374_v53  ;;  %v411_v57 = vadd.f32 %v410_v56, %v374_v53 }
 0x150   : > { %415 = vst [vmem:[%s242_s24 + $0x10] sm:$0xff] %v397_v55 }
 0x151   : > { %416 = vst [vmem:[%s242_s24 + $0x18] sm:$0xff] %v411_v57 }
 0x152   : > { %648 = shalt.err (!%p645_p5)
}
 0x153   : > { %s702_s15 = smov 256   ;;  %s703_s17 = smov 16  }
 0x154   : > { %560 = dma.vmem_to_hbm [thread:$0]  (%p774_p4), %s433_s7, 512, %s435_s8, %s418_s21, %s702_s15, %s702_s15, %s703_s17  }
 0x155 PF: > { %p566_p6 = scmp.ge.s32.totalorder %s699_s23, 2  ;;  %s449_s24 = sand.u32 1, %s679_s18  }
 0x156   : > { %s450_s25 = scalar_lea.sflag [#allocation3], %s449_s24 }
 0x157   : > { %p563_p7 = pnand %p566_p6, %p781_p8 }
 0x159   : > { %p564_p9 = pneg %p563_p7 }
 0x15b   : > { %674 = dma.done.wait (%p564_p9), %s450_s25, 512  }
 0x15c   : > { %676 = vsyncadd (%p564_p9), %s450_s25, 4294966784  ;;  %s18_s23 = sadd.s32 1, %s699_s23   ;;  %s866_s18 = smov %s683_s19 }
 0x15d   : > { %p15_p10 = scmp.ge.s32.totalorder %s18_s23, 4   ;;  %s867_s19 = smov %s687_s20 }
 0x15e   : > { %s868_s20 = smov %s787_s6  ;;  %s869_s21 = smov %s695_s22 }
 0x15f   : > { %s870_s22 = smov %s872_s26  ;;  %17 = sbr.rel (!%p15_p10) target bundleno = 4 (0x4), region = 75 }
 0x164   :  { %456 = vsyncpa [#allocation3], 1 }
 0x165   :  { %458 = vsyncpa [#allocation3 + $0x1], 1 }

</bundles_post_ra>
